<compile_context>
chip_gen: v6e
topology: v6e:2x2x1
jax: 0.10.0
libtpu: 0.0.40
codegen_flags: <defaults>
</compile_context>

<pallas_src>
import functools
import inspect

import jax
import jax.numpy as jnp
from jax import lax
from jax.experimental import pallas as pl
from jax.experimental.pallas import tpu as pltpu

_LANES = 128


def _channel_attention_kernel(x_ref, w1t_ref, w2t_ref, o_ref,
                              sum_acc, max_acc, pooled_scr,
                              *, bt, ts, s_total, ragged):
    """One grid step.

    x_ref:      (bt, C, ts)   input tile, native dtype
    w1t_ref:    (C, C_hid)    fc1 weight (transposed), f32, grid-resident
    w2t_ref:    (C_hid, C)    fc2 weight (transposed), f32, grid-resident
    o_ref:      (1, bt, C)    sigmoid attention output block
    sum_acc:    (bt, C) f32   running spatial sum   (resident across s axis)
    max_acc:    (bt, C) f32   running spatial max   (resident across s axis)
    pooled_scr: (2*bt, C) f32 stacked avg/max pooled vectors for the fused MLP
    """
    s_idx = pl.program_id(1)
    n_s = pl.num_programs(1)

    @pl.when(s_idx == 0)
    def _init():
        sum_acc[...] = jnp.zeros_like(sum_acc)
        max_acc[...] = jnp.full(max_acc.shape, -jnp.inf, dtype=jnp.float32)

    def _accumulate(masked):
        # Per-tile lane (XLU) reductions straight into the small (bt, C)
        # accumulators: the live vreg set stays tiny (no spills), and the XLU
        # has slack since the kernel is HBM-DMA bound.
        if masked:
            lane = lax.broadcasted_iota(jnp.int32, (1, 1, ts), 2)
            valid = (s_idx * ts + lane) < s_total
            xf = x_ref[...].astype(jnp.float32)
            xs = jnp.where(valid, xf, 0.0)        # exact for the sum
            xm = jnp.where(valid, xf, -jnp.inf)   # exact for the max
        else:
            xs = x_ref[...].astype(jnp.float32)
            xm = x_ref[...].astype(jnp.float32)
        sum_acc[...] = sum_acc[...] + jnp.sum(xs, axis=-1)
        max_acc[...] = jnp.maximum(max_acc[...], jnp.max(xm, axis=-1))

    if ragged:
        # Only the last spatial tile can run past S: every other step stays on
        # the cheap unmasked path (no iota / select / -inf in the live set).
        @pl.when(s_idx < n_s - 1)
        def _body():
            _accumulate(False)

        @pl.when(s_idx == n_s - 1)
        def _tail():
            _accumulate(True)
    else:
        _accumulate(False)

    @pl.when(s_idx == n_s - 1)
    def _finalize():
        avg = sum_acc[...] * (1.0 / s_total)       # (bt, C)
        mxv = max_acc[...]                         # (bt, C)

        # Fused avg/max MLP: one (2*bt, C) @ (C, C_hid) and one
        # (2*bt, C_hid) @ (C_hid, C) instead of two degenerate passes each.
        pooled_scr[0:bt, :] = avg
        pooled_scr[bt:2 * bt, :] = mxv
        pooled = pooled_scr[...]                   # (2*bt, C)

        h = jnp.dot(pooled, w1t_ref[...],
                    preferred_element_type=jnp.float32)     # (2*bt, C_hid)
        h = jnp.maximum(h, 0.0)
        y = jnp.dot(h, w2t_ref[...],
                    preferred_element_type=jnp.float32)     # (2*bt, C)
        out = y[0:bt, :] + y[bt:2 * bt, :]                  # (bt, C)

        # Exact sigmoid on the EUP: sigmoid(x) = 0.5 * (tanh(x/2) + 1).
        o_ref[0] = (0.5 * (jnp.tanh(0.5 * out) + 1.0)).astype(o_ref.dtype)


def _largest_divisor_leq(n, cap):
    cap = max(1, min(n, int(cap)))
    for d in range(cap, 0, -1):
        if n % d == 0:
            return d
    return 1


def channel_attention(x_nchw, fc1_w, fc2_w, *, block_bytes_target=4 << 20,
                      bt=None):
    """x_nchw: (B, C, H, W); fc1_w: (C//r, C, 1, 1); fc2_w: (C, C//r, 1, 1).
    Returns the sigmoid attention map of shape (B, C, 1, 1) (PyTorch parity)."""
    B, C, H, W = x_nchw.shape
    S = H * W
    C_hid = fc1_w.shape[0]
    itemsize = jnp.dtype(x_nchw.dtype).itemsize

    # Pre-cast / pre-transpose the tiny 1x1-conv weights once (grid-invariant).
    w1t = fc1_w.reshape(C_hid, C).astype(jnp.float32).T    # (C, C_hid)
    w2t = fc2_w.reshape(C, C_hid).astype(jnp.float32).T    # (C_hid, C)

    # ---- per-generation VMEM budget -------------------------------------
    try:
        # 128 MiB on v5e/v6e, 64 MiB on v7x.
        vmem_cap = int(pltpu.get_tpu_info().vmem_capacity_bytes)
    except Exception:
        vmem_cap = 64 << 20    # conservative fallback
    # Streaming sweet spot is ~2-4 MiB per input block; never let the
    # double-buffered input (+ one f32 temp) exceed ~half of physical VMEM.
    max_block_bytes = min(block_bytes_target, vmem_cap // 6)

    s_round = int(pl.cdiv(S, _LANES)) * _LANES

    # ---- batch tile -------------------------------------------------------
    if bt is None:
        # Keep >= 2 steps on the parallel (batch) axis whenever B >= 2 so
        # v7x's second TensorCore gets work; costs one extra cheap step on
        # single-TC chips.  Also respect the VMEM budget at the minimum
        # (128-lane) spatial tile.
        bt_cap = B if B < 2 else max(1, B // 2)
        bt_cap = min(bt_cap,
                     max(1, max_block_bytes // (C * min(s_round, _LANES) * itemsize)))
        bt = _largest_divisor_leq(B, bt_cap)
    assert B % bt == 0, "batch tile must divide B"

    # ---- spatial tile: multiple of 128 lanes, as large as the budget allows.
    ts_budget = max(_LANES,
                    (max_block_bytes // (bt * C * itemsize)) // _LANES * _LANES)
    ts = int(min(s_round, ts_budget))
    num_s_tiles = int(pl.cdiv(S, ts))
    ragged = (num_s_tiles * ts != S)   # last tile masked in-kernel, no jnp.pad

    x = x_nchw.reshape(B, C, S)

    # ---- VMEM accounting / compiler params --------------------------------
    block_bytes = bt * C * ts * itemsize
    w_bytes = (C * C_hid + C_hid * C) * 4
    scratch_bytes = (2 * bt * C + 2 * bt * C) * 4
    out_block_bytes = bt * C * itemsize
    # 2x input (double buffer) + 1x f32 temp + weights + scratch + output.
    need = 3 * block_bytes + 2 * w_bytes + scratch_bytes + 2 * out_block_bytes \
        + (2 << 20)
    vmem_limit = int(min((vmem_cap * 3) // 4, max(2 * need, 32 << 20)))

    kernel = functools.partial(
        _channel_attention_kernel,
        bt=bt, ts=ts, s_total=S, ragged=ragged)

    # Deeper buffering only helps when blocks are small enough that the DMA
    # issue latency is exposed AND there are enough grid steps to fill it.
    x_spec_kwargs = {}
    if ("pipeline_mode" in inspect.signature(pl.BlockSpec).parameters
            and block_bytes <= (512 << 10)
            and (B // bt) * num_s_tiles >= 3):
        x_spec_kwargs["pipeline_mode"] = pl.Buffered(3)

    cost = pl.CostEstimate(
        flops=int(2 * B * C * S + 4 * (2 * B) * C * C_hid),
        transcendentals=int(B * C),
        bytes_accessed=int(B * C * S * itemsize + w_bytes + B * C * itemsize),
    )

    out = pl.pallas_call(
        kernel,
        # Output laid out as (B//bt, bt, C): the last two block dims equal the
        # array dims, so any divisor bt is layout-legal and the store is
        # lane-dense.  Reshaped to (B, C, 1, 1) below (free).
        out_shape=jax.ShapeDtypeStruct((B // bt, bt, C), x_nchw.dtype),
        grid_spec=pltpu.PrefetchScalarGridSpec(
            num_scalar_prefetch=0,
            grid=(B // bt, num_s_tiles),
            in_specs=[
                pl.BlockSpec((bt, C, ts), lambda b, s: (b, 0, s),
                             **x_spec_kwargs),
                pl.BlockSpec((C, C_hid), lambda b, s: (0, 0)),
                pl.BlockSpec((C_hid, C), lambda b, s: (0, 0)),
            ],
            out_specs=pl.BlockSpec((1, bt, C), lambda b, s: (b, 0, 0)),
            scratch_shapes=[
                pltpu.VMEM((bt, C), jnp.float32),        # running spatial sum
                pltpu.VMEM((bt, C), jnp.float32),        # running spatial max
                pltpu.VMEM((2 * bt, C), jnp.float32),    # stacked avg/max pools
            ],
        ),
        compiler_params=pltpu.CompilerParams(
            dimension_semantics=("parallel", "arbitrary"),
            vmem_limit_bytes=vmem_limit),
        cost_estimate=cost,
    )(x, w1t, w2t)
    return out.reshape(B, C, 1, 1)


def _reference(x_nchw, fc1_w, fc2_w):
    # Plain-JAX reference mirroring the PyTorch forward exactly.
    B, C, H, W = x_nchw.shape
    C_hid = fc1_w.shape[0]
    w1 = fc1_w.reshape(C_hid, C).astype(jnp.float32)
    w2 = fc2_w.reshape(C, C_hid).astype(jnp.float32)
    xf = x_nchw.astype(jnp.float32)
    avg = jnp.mean(xf, axis=(2, 3))                       # (B, C)
    mxv = jnp.max(xf, axis=(2, 3))                        # (B, C)

    def mlp(v):  # v: (B, C)
        return jnp.maximum(v @ w1.T, 0.0) @ w2.T          # (B, C)

    out = jax.nn.sigmoid(mlp(avg) + mlp(mxv))
    return out.reshape(B, C, 1, 1).astype(x_nchw.dtype)


def _run_case(key, B, C, H, W, ratio):
    C_hid = max(1, C // ratio)
    kx, k1, k2 = jax.random.split(key, 3)
    x = jax.random.normal(kx, (B, C, H, W), dtype=jnp.float32)
    fc1_w = 0.1 * jax.random.normal(k1, (C_hid, C, 1, 1), dtype=jnp.float32)
    fc2_w = 0.1 * jax.random.normal(k2, (C, C_hid, 1, 1), dtype=jnp.float32)
    y = channel_attention(x, fc1_w, fc2_w)
    jax.block_until_ready(y)
    y_ref = _reference(x, fc1_w, fc2_w)
    assert y.shape == (B, C, 1, 1)
    assert jnp.allclose(y, y_ref, atol=1e-5, rtol=1e-5), \
        f"mismatch vs reference for shape {(B, C, H, W)}"


if __name__ == "__main__":
    key = jax.random.PRNGKey(0)
    k1, k2, k3 = jax.random.split(key, 3)

    # 1) Basic case: spatial size an exact multiple of 128 lanes (no mask path).
    _run_case(k1, B=2, C=64, H=16, W=16, ratio=16)

    # 2) Ragged spatial size + multi-step parallel batch axis (exercises the
    #    in-kernel masked last tile and bt = B // 2 megacore split).
    _run_case(k2, B=4, C=32, H=37, W=37, ratio=16)

    # 3) Non-power-of-two batch (exercises the divisor-based bt fallback) with
    #    a ragged small spatial extent.
    _run_case(k3, B=6, C=32, H=9, W=9, ratio=16)

    print("KERNEL_OK")
</pallas_src>

<mosaic_0001>
module attributes {stable_mosaic.version = 11 : i64} {
  func.func @_channel_attention_kernel(%arg0: i32, %arg1: i32, %arg2: memref<1x64x256xf32, #tpu.memory_space<vmem>>, %arg3: memref<64x4xf32, #tpu.memory_space<vmem>>, %arg4: memref<4x64xf32, #tpu.memory_space<vmem>>, %arg5: memref<1x1x64xf32, #tpu.memory_space<vmem>>, %arg6: memref<1x64xf32, #tpu.memory_space<vmem>>, %arg7: memref<1x64xf32, #tpu.memory_space<vmem>>, %arg8: memref<2x64xf32, #tpu.memory_space<vmem>>) attributes {dimension_semantics = [#tpu.dimension_semantics<parallel>, #tpu.dimension_semantics<arbitrary>], iteration_bounds = array<i64: 2, 1>, scalar_prefetch = 0 : i64, scratch_operands = 3 : i64, tpu.core_type = #tpu.core_type<tc>, window_params = [{transform_indices = @transform_0, window_bounds = array<i64: 1, 64, 256>}, {pipeline_mode = #tpu.pipeline_mode<synchronous>, transform_indices = @transform_1, window_bounds = array<i64: 64, 4>}, {pipeline_mode = #tpu.pipeline_mode<synchronous>, transform_indices = @transform_2, window_bounds = array<i64: 4, 64>}, {transform_indices = @transform_3, window_bounds = array<i64: 1, 1, 64>}]} {
    %c0_i32 = arith.constant 0 : i32
    %0 = arith.cmpi eq, %arg1, %c0_i32 : i32
    %1 = arith.extui %0 : i1 to i32
    %c0_i32_0 = arith.constant 0 : i32
    %2 = arith.cmpi ne, %1, %c0_i32_0 : i32
    scf.if %2 {
      %cst_17 = arith.constant 0.000000e+00 : f32
      %16 = vector.broadcast %cst_17 : f32 to vector<1x64xf32>
      %c0_18 = arith.constant 0 : index
      %c0_19 = arith.constant 0 : index
      %17 = vector.load %arg6[%c0_18, %c0_19] : memref<1x64xf32, #tpu.memory_space<vmem>>, vector<1x64xf32>
      tpu.vector_store %arg6[%c0_18, %c0_19], %16 {strides = array<i32>} : memref<1x64xf32, #tpu.memory_space<vmem>>, vector<1x64xf32>,
      %cst_20 = arith.constant 0xFF800000 : f32
      %18 = vector.broadcast %cst_20 : f32 to vector<1x64xf32>
      %c0_21 = arith.constant 0 : index
      %c0_22 = arith.constant 0 : index
      %19 = vector.load %arg7[%c0_21, %c0_22] : memref<1x64xf32, #tpu.memory_space<vmem>>, vector<1x64xf32>
      tpu.vector_store %arg7[%c0_21, %c0_22], %18 {strides = array<i32>} : memref<1x64xf32, #tpu.memory_space<vmem>>, vector<1x64xf32>,
    } else {
    }
    %c0 = arith.constant 0 : index
    %c0_1 = arith.constant 0 : index
    %c0_2 = arith.constant 0 : index
    %3 = vector.load %arg2[%c0, %c0_1, %c0_2] : memref<1x64x256xf32, #tpu.memory_space<vmem>>, vector<1x64x256xf32>
    %c0_3 = arith.constant 0 : index
    %c0_4 = arith.constant 0 : index
    %c0_5 = arith.constant 0 : index
    %4 = vector.load %arg2[%c0_3, %c0_4, %c0_5] : memref<1x64x256xf32, #tpu.memory_space<vmem>>, vector<1x64x256xf32>
    %c0_6 = arith.constant 0 : index
    %c0_7 = arith.constant 0 : index
    %5 = vector.load %arg6[%c0_6, %c0_7] : memref<1x64xf32, #tpu.memory_space<vmem>>, vector<1x64xf32>
    %cst = arith.constant dense<0.000000e+00> : vector<1x64xf32>
    %6 = vector.multi_reduction <add>, %3, %cst [2] : vector<1x64x256xf32> to vector<1x64xf32>
    %7 = arith.addf %5, %6 : vector<1x64xf32>
    %c0_8 = arith.constant 0 : index
    %c0_9 = arith.constant 0 : index
    %8 = vector.load %arg6[%c0_8, %c0_9] : memref<1x64xf32, #tpu.memory_space<vmem>>, vector<1x64xf32>
    tpu.vector_store %arg6[%c0_8, %c0_9], %7 {strides = array<i32>} : memref<1x64xf32, #tpu.memory_space<vmem>>, vector<1x64xf32>,
    %c0_10 = arith.constant 0 : index
    %c0_11 = arith.constant 0 : index
    %9 = vector.load %arg7[%c0_10, %c0_11] : memref<1x64xf32, #tpu.memory_space<vmem>>, vector<1x64xf32>
    %cst_12 = arith.constant dense<0xFF800000> : vector<1x64xf32>
    %10 = vector.multi_reduction <maximumf>, %4, %cst_12 [2] : vector<1x64x256xf32> to vector<1x64xf32>
    %11 = arith.maximumf %9, %10 : vector<1x64xf32>
    %c0_13 = arith.constant 0 : index
    %c0_14 = arith.constant 0 : index
    %12 = vector.load %arg7[%c0_13, %c0_14] : memref<1x64xf32, #tpu.memory_space<vmem>>, vector<1x64xf32>
    tpu.vector_store %arg7[%c0_13, %c0_14], %11 {strides = array<i32>} : memref<1x64xf32, #tpu.memory_space<vmem>>, vector<1x64xf32>,
    %c0_i32_15 = arith.constant 0 : i32
    %13 = arith.cmpi eq, %arg1, %c0_i32_15 : i32
    %14 = arith.extui %13 : i1 to i32
    %c0_i32_16 = arith.constant 0 : i32
    %15 = arith.cmpi ne, %14, %c0_i32_16 : i32
    scf.if %15 {
      %c0_17 = arith.constant 0 : index
      %c0_18 = arith.constant 0 : index
      %16 = vector.load %arg6[%c0_17, %c0_18] : memref<1x64xf32, #tpu.memory_space<vmem>>, vector<1x64xf32>
      %cst_19 = arith.constant 3.906250e-03 : f32
      %17 = vector.broadcast %cst_19 : f32 to vector<1x64xf32>
      %18 = arith.mulf %16, %17 : vector<1x64xf32>
      %c0_20 = arith.constant 0 : index
      %c0_21 = arith.constant 0 : index
      %19 = vector.load %arg7[%c0_20, %c0_21] : memref<1x64xf32, #tpu.memory_space<vmem>>, vector<1x64xf32>
      %c0_22 = arith.constant 0 : index
      %c0_23 = arith.constant 0 : index
      %20 = vector.load %arg8[%c0_22, %c0_23] : memref<2x64xf32, #tpu.memory_space<vmem>>, vector<1x64xf32>
      tpu.vector_store %arg8[%c0_22, %c0_23], %18 {strides = array<i32>} : memref<2x64xf32, #tpu.memory_space<vmem>>, vector<1x64xf32>,
      %c1 = arith.constant 1 : index
      %c0_24 = arith.constant 0 : index
      %21 = vector.load %arg8[%c1, %c0_24] : memref<2x64xf32, #tpu.memory_space<vmem>>, vector<1x64xf32>
      tpu.vector_store %arg8[%c1, %c0_24], %19 {strides = array<i32>} : memref<2x64xf32, #tpu.memory_space<vmem>>, vector<1x64xf32>,
      %c0_25 = arith.constant 0 : index
      %c0_26 = arith.constant 0 : index
      %22 = vector.load %arg8[%c0_25, %c0_26] : memref<2x64xf32, #tpu.memory_space<vmem>>, vector<2x64xf32>
      %c0_27 = arith.constant 0 : index
      %c0_28 = arith.constant 0 : index
      %23 = vector.load %arg3[%c0_27, %c0_28] : memref<64x4xf32, #tpu.memory_space<vmem>>, vector<64x4xf32>
      %cst_29 = arith.constant dense<0.000000e+00> : vector<2x4xf32>
      %24 = tpu.matmul %22, %23, %cst_29 {dimension_numbers = #tpu.dot_dimension_numbers<[1], [0], [0], [1], [0, 0, 1, 1], [], []>} : vector<2x64xf32>, vector<64x4xf32>, vector<2x4xf32> -> vector<2x4xf32>
      %cst_30 = arith.constant 0.000000e+00 : f32
      %25 = vector.broadcast %cst_30 : f32 to vector<2x4xf32>
      %26 = arith.maximumf %24, %25 : vector<2x4xf32>
      %c0_31 = arith.constant 0 : index
      %c0_32 = arith.constant 0 : index
      %27 = vector.load %arg4[%c0_31, %c0_32] : memref<4x64xf32, #tpu.memory_space<vmem>>, vector<4x64xf32>
      %cst_33 = arith.constant dense<0.000000e+00> : vector<2x64xf32>
      %28 = tpu.matmul %26, %27, %cst_33 {dimension_numbers = #tpu.dot_dimension_numbers<[1], [0], [0], [1], [0, 0, 1, 1], [], []>} : vector<2x4xf32>, vector<4x64xf32>, vector<2x64xf32> -> vector<2x64xf32>
      %29 = vector.extract_strided_slice %28 {offsets = [0, 0], sizes = [1, 64], strides = [1, 1]} : vector<2x64xf32> to vector<1x64xf32>
      %30 = vector.extract_strided_slice %28 {offsets = [1, 0], sizes = [1, 64], strides = [1, 1]} : vector<2x64xf32> to vector<1x64xf32>
      %31 = arith.addf %29, %30 : vector<1x64xf32>
      %cst_34 = arith.constant 5.000000e-01 : f32
      %32 = vector.broadcast %cst_34 : f32 to vector<1x64xf32>
      %33 = arith.mulf %32, %31 : vector<1x64xf32>
      %34 = math.tanh %33 : vector<1x64xf32>
      %cst_35 = arith.constant 1.000000e+00 : f32
      %35 = vector.broadcast %cst_35 : f32 to vector<1x64xf32>
      %36 = arith.addf %34, %35 : vector<1x64xf32>
      %cst_36 = arith.constant 5.000000e-01 : f32
      %37 = vector.broadcast %cst_36 : f32 to vector<1x64xf32>
      %38 = arith.mulf %37, %36 : vector<1x64xf32>
      %c0_37 = arith.constant 0 : index
      %c0_38 = arith.constant 0 : index
      %c0_39 = arith.constant 0 : index
      %39 = vector.load %arg5[%c0_37, %c0_38, %c0_39] : memref<1x1x64xf32, #tpu.memory_space<vmem>>, vector<1x1x64xf32>
      %40 = vector.shape_cast %39 : vector<1x1x64xf32> to vector<1x64xf32>
      %41 = vector.shape_cast %38 : vector<1x64xf32> to vector<1x1x64xf32>
      tpu.vector_store %arg5[%c0_37, %c0_38, %c0_39], %41 {strides = array<i32>} : memref<1x1x64xf32, #tpu.memory_space<vmem>>, vector<1x1x64xf32>,
    } else {
    }
    return
  }
  func.func @transform_0(%arg0: i32, %arg1: i32) -> (i32, i32, i32) {
    %c0_i32 = arith.constant 0 : i32
    %c0_i32_0 = arith.constant 0 : i32
    return %arg0, %c0_i32, %arg1 : i32, i32, i32
  }
  func.func @transform_1(%arg0: i32, %arg1: i32) -> (i32, i32) {
    %c0_i32 = arith.constant 0 : i32
    %c0_i32_0 = arith.constant 0 : i32
    %c0_i32_1 = arith.constant 0 : i32
    return %c0_i32, %c0_i32_0 : i32, i32
  }
  func.func @transform_2(%arg0: i32, %arg1: i32) -> (i32, i32) {
    %c0_i32 = arith.constant 0 : i32
    %c0_i32_0 = arith.constant 0 : i32
    %c0_i32_1 = arith.constant 0 : i32
    return %c0_i32, %c0_i32_0 : i32, i32
  }
  func.func @transform_3(%arg0: i32, %arg1: i32) -> (i32, i32, i32) {
    %c0_i32 = arith.constant 0 : i32
    %c0_i32_0 = arith.constant 0 : i32
    %c0_i32_1 = arith.constant 0 : i32
    return %arg0, %c0_i32, %c0_i32_0 : i32, i32, i32
  }
}

</mosaic_0001>

<bundles_post_ra>
// kernel: tpu_custom_call.1
= control target key start
LH: loop header
LB: loop body
LE: loop exit
PB: predicated region body
PF: predicated region fallthrough
CT: control target
= control target key end

     0   :  { %8 = vsyncpa [#allocation6], 0  ;;  %s2796_s0 = inlined_call_operand.hbm [shape: f32[2,64,256], index: 0, kind: input, shape index: {}]   ;;  %s2797_s1 = inlined_call_operand.vmem [shape: f32[64,4], index: 1, kind: input, shape index: {}]   ;;  %s2798_s2 = inlined_call_operand.vmem [shape: f32[4,64], index: 2, kind: input, shape index: {}]   ;;  %s2799_s3 = inlined_call_operand.hbm [shape: f32[2,1,64], index: 3, kind: output, shape index: {}]  }
   0x1   :  { %10 = vsyncpa [#allocation6 + $0x1], 0 }
   0x2   :  { %11 = vsyncpa [#allocation7], 0 }
   0x3   :  { %13 = vsyncpa [#allocation7 + $0x1], 0  ;;  %s2300_s12 = smov 0   ;;  %s2302_s13 = smov 0  }
   0x4   :  { %s2304_s14 = smov 0   ;;  %s2306_s15 = smov 0  }
   0x5   :  { %s2308_s16 = smov 0   ;;  %s2310_s17 = smov 0  }
   0x6 LB: > { %s2037_s18 = sadd.s32 4294967295, %s2269_s17   ;;  %s2038_s19 = sadd.s32 4294967294, %s2269_s17   ;;  %s2269_s17 = sphi %s2310_s17, %s19_s17   ;;  %s2265_s16 = sphi %s2308_s16, %s2810_s16   ;;  %s2261_s15 = sphi %s2306_s15, %s2809_s15   ;;  %s2257_s14 = sphi %s2304_s14, %s2808_s14   ;;  %s2253_s13 = sphi %s2302_s13, %s2807_s13   ;;  %s2249_s12 = sphi %s2300_s12, %s2806_s12  }
   0x7   : > { %s31_s20 = sadd.s32 1, %s2265_s16  ;;  %s40_s21 = sadd.s32 1, %s2257_s14 }
   0x8   : > { %p33_p0 = scmp.ge.s32.totalorder %s31_s20, 2  ;;  %p47_p1 = scmp.ne.s32.totalorder %s2257_s14, %s2253_s13 }
   0x9   : > { %p48_p2 = scmp.eq.s32.totalorder %s2269_s17, 0  ;;  %p53_p3 = scmp.ne.s32.totalorder %s2253_s13, %s2249_s12 }
   0xa   : > { %s2812_s20 = smov (%p33_p0, %s31_s20), 0  ;;  %p54_p5 = scmp.eq.s32.totalorder %s2037_s18, 0 }
   0xb   : > { %p2341_p4 = por %p48_p2, %p47_p1  ;;  %s35_s23 = ssub.s32 %s2265_s16, %s2812_s20 }
   0xc   : > { %p119_p6 = scmp.eq.s32.totalorder %s2037_s18, 1  ;;  %p38_p7 = scmp.eq.s32.totalorder %s35_s23, 0 }
   0xd   : > { %p2347_p8 = por %p54_p5, %p53_p3  ;;  %p125_p10 = scmp.eq.s32.totalorder %s2038_s19, 1 }
   0xe   : > { %p2351_p9 = por %p119_p6, %p47_p1  ;;  %p2100_p13 = scmp.lt.s32.totalorder %s2269_s17, 2 }
   0xf   : > { %s2356_s26 = scalar_select %p38_p7, %s2257_s14, %s40_s21  }
  0x10   : > { %p2358_p11 = por %p125_p10, %p53_p3  ;;  %s151_s28 = sand.u32 1, %s2257_s14  }
  0x11   : > { %s2041_s29 = sshll.u32 %s151_s28, 7  ;;  %s2052_s30 = sshll.u32 %s2265_s16, 11 }
  0x12   : > { %s163_s6 = scalar_lea.hbm %s2796_s0, %s2052_s30  ;;  %s155_s7 = scalar_lea.vmem [#allocation5], %s2041_s29 }
  0x13   : > { %s164_s8 = sshll.u32 %s155_s7, 4  ;;  %p2371_p0 = pnand %p2100_p13, %p2341_p4  ;;  %s165_s8 = int_to_ptr.vmem [resolvable:$true] %s164_s8 }
  0x14   : > { %p2044_p1 = scmp.ge.s32.totalorder %s2269_s17, 1  ;;  %s152_s10 = scalar_lea.sflag [#allocation6], %s151_s28 }
  0x15   : > { %p2163_p2 = pneg %p2371_p0  ;;  %s2174_s11 = scalar_lea.vmem %s165_s8, 2048 }
  0x16   : > { %p2175_p3 = scmp.ne.s32.totalorder %s165_s8, %s2174_s11  ;;  %s2271_s18 = smov [#allocation5]  }
  0x17   : > { %s2179_s19 = sshll.u32 %s2271_s18, 4  ;;  %s2180_s19 = int_to_ptr.vmem [resolvable:$false] %s2179_s19 }
  0x18   : > { %p2177_p5 = pnand %p2175_p3, %p2163_p2  ;;  %s2181_s21 = scalar_lea.vmem %s2180_s19, 4096 }
  0x19   : > { %p2182_p7 = scmp.lt.s32.totalorder %s165_s8, %s2180_s19  ;;  %p2183_p10 = scmp.lt.s32.totalorder %s2181_s21, %s2174_s11 }
  0x1a   : > { %p2178_p6 = pneg %p2177_p5 }
  0x1b   : > { %p2184_p12 = por %p2183_p10, %p2182_p7 }
  0x1d   : > { %p2185_p4 = pnand %p2184_p12, %p2178_p6 }
  0x1f   : > { %2188 = shalt.err (!%p2185_p4)
}
  0x20   : > { %s2272_s22 = smov 256   ;;  %s2273_s23 = smov 16  }
  0x21   : > { %2095 = dma.hbm_to_vmem [thread:$0]  (!%p2371_p0), %s163_s6, 2048, %s165_s8, %s152_s10, %s2272_s22, %s2272_s22, %s2273_s23  }
  0x22   : > { %p172_p13 = scmp.lt.s32.totalorder %s2269_s17, 3 }
  0x24   : > { %p173_p2 = pnand %p2044_p1, %p172_p13 }
  0x25   : > { %s2384_s28 = sand.u32 (!%p173_p2), 1, %s2253_s13  }
  0x26   : > { %176 = sbr.rel (%p173_p2) target bundleno = 851 (0x353), region = 32  ;;  %s2045_s29 = sshll.u32 (!%p173_p2), %s2384_s28, 7 }
  0x27   : > { %s179_s30 = scalar_lea.sflag (!%p173_p2), [#allocation6], %s2384_s28  ;;  %s2388_s4 = scalar_lea.vmem (!%p173_p2), [#allocation5], %s2045_s29 }
  0x2b   : > { %2240 = dma.done.wait (%p2347_p8), %s179_s30, 2048  }
  0x2c   : > { %2242 = vsyncadd (%p2347_p8), %s179_s30, 4294965248  ;;  %v212_v0 = vld [vmem:[%s2388_s4] sm:$0xff]  ;;  %v213_v1 = vld [vmem:[%s2388_s4 + $0x8] sm:$0xff]  ;;  %v2274_v28 = vmov 0   ;;  %v261_v33 = vlaneseq  ;;  %v2275_v34 = vmov 1966171168  }
  0x2d   : > { %v216_v2 = vld [vmem:[%s2388_s4 + $0x20] sm:$0xff]  ;;  %v229_v3 = vadd.f32 %v213_v1, %v212_v0  ;;  %v217_v4 = vld [vmem:[%s2388_s4 + $0x28] sm:$0xff]  ;;  %v214_v5 = vld [vmem:[%s2388_s4 + $0x10] sm:$0xff]  ;;  %v1007_v12 = vmax.f32 %v212_v0, %v213_v1  ;;  %2157 = vset.pattern.permute.xlu0 %v2274_v28  ;;  %2158 = vset.pattern.permute.xlu1 %v2274_v28  ;;  %v522_v35 = vunpack.c.l.s4 %v2275_v34  ;;  %vm209_vm0 = vcmask 516096   ;;  %s2049_s6 = sshll.u32 %s2261_s15, 4  ;;  %s203_s7 = scalar_lea.vmem [#allocation8], %s2384_s28 }
  0x2e   : > { %v215_v6 = vld [vmem:[%s2388_s4 + $0x18] sm:$0xff]  ;;  %v235_v7 = vadd.f32 %v217_v4, %v216_v2  ;;  %v218_v8 = vld [vmem:[%s2388_s4 + $0x30] sm:$0xff]  ;;  %v220_v14 = vld [vmem:[%s2388_s4 + $0x40] sm:$0xff]  ;;  %v1013_v17 = vmax.f32 %v216_v2, %v217_v4  ;;  %v2411_v36 = vshrl.u32 %v261_v33, 7  ;;  %vm2278_vm1 = vmmov 0   ;;  %s1960_s8 = sshll.u32 %s203_s7, 4  ;;  %s1958_s11 = scalar_lea.hbm %s2799_s3, %s2049_s6  ;;  %s1961_s8 = int_to_ptr.vmem [resolvable:$true] %s1960_s8 }
  0x2f   : > { %v219_v9 = vld [vmem:[%s2388_s4 + $0x38] sm:$0xff]  ;;  %230 = vadd.xlane.f32.xlu0 %v229_v3  ;;  %v232_v10 = vadd.f32 %v215_v6, %v214_v5  ;;  %v1010_v13 = vmax.f32 %v214_v5, %v215_v6  ;;  %v221_v15 = vld [vmem:[%s2388_s4 + $0x48] sm:$0xff]  ;;  %v222_v18 = vld [vmem:[%s2388_s4 + $0x50] sm:$0xff]  ;;  %v523_v37 = vunpack.c.0.s8 %v522_v35  ;;  %vm944_vm2 = vcmask 130112   ;;  %s1948_s18 = scalar_lea.sflag [#allocation7], %s2384_s28  ;;  %s2189_s19 = scalar_lea.vmem %s1961_s8, 16 }
  0x30   : > { %236 = vadd.xlane.f32.xlu1 %v235_v7  ;;  %v238_v11 = vadd.f32 %v219_v9, %v218_v8  ;;  %v241_v16 = vadd.f32 %v221_v15, %v220_v14  ;;  %v223_v19 = vld [vmem:[%s2388_s4 + $0x58] sm:$0xff]  ;;  %v1016_v21 = vmax.f32 %v218_v8, %v219_v9  ;;  %v224_v22 = vld [vmem:[%s2388_s4 + $0x60] sm:$0xff]  ;;  %v225_v23 = vld [vmem:[%s2388_s4 + $0x68] sm:$0xff]  ;;  %v1019_v25 = vmax.f32 %v220_v14, %v221_v15  ;;  %p2190_p8 = scmp.ne.s32.totalorder %s1961_s8, %s2189_s19  ;;  %s2279_s21 = smov [#allocation8]  }
  0x31   : > { %v244_v20 = vadd.f32 %v223_v19, %v222_v18  ;;  %v247_v24 = vadd.f32 %v225_v23, %v224_v22  ;;  %v226_v26 = vld [vmem:[%s2388_s4 + $0x70] sm:$0xff]  ;;  %v227_v27 = vld [vmem:[%s2388_s4 + $0x78] sm:$0xff]  ;;  %v1022_v30 = vmax.f32 %v222_v18, %v223_v19  ;;  %v1025_v31 = vmax.f32 %v224_v22, %v225_v23  ;;  %s2193_s22 = sshll.u32 %s2279_s21, 4  ;;  %s2194_s22 = int_to_ptr.vmem [resolvable:$false] %s2193_s22 }
  0x32   : > { %v250_v29 = vadd.f32 %v227_v27, %v226_v26  ;;  %v1028_v32 = vmax.f32 %v226_v26, %v227_v27  ;;  %v2414_v38 = vsub.s32 0, %v2411_v36  ;;  %v2417_v39 = vsub.s32 1, %v2411_v36  ;;  %p2191_p12 = pnand %p2190_p8, %p2351_p9  ;;  %s2195_s15 = scalar_lea.vmem %s2194_s22, 32 }
  0x33   : > { %233 = vadd.xlane.f32.xlu0 %v232_v10  ;;  %v2420_v40 = vsub.s32 2, %v2411_v36  ;;  %v2423_v41 = vsub.s32 3, %v2411_v36  ;;  %v2426_v42 = vsub.s32 4, %v2411_v36  ;;  %v2429_v43 = vsub.s32 5, %v2411_v36  ;;  %p2196_p1 = scmp.lt.s32.totalorder %s1961_s8, %s2194_s22  ;;  %p2197_p3 = scmp.lt.s32.totalorder %s2195_s15, %s2189_s19 }
  0x34   : > { %239 = vadd.xlane.f32.xlu1 %v238_v11  ;;  %v2432_v44 = vsub.s32 6, %v2411_v36  ;;  %v2435_v45 = vsub.s32 7, %v2411_v36  ;;  %v2438_v47 = vsub.s32 %v523_v37, %v2411_v36  ;;  %vm951_vm3 = vcmask 195712   ;;  %p2192_p0 = pneg %p2191_p12 }
  0x35   : > { %vm958_vm4 = vcmask 261312   ;;  %vm965_vm5 = vcmask 326912   ;;  %vm972_vm6 = vcmask 392512   ;;  %vm979_vm7 = vcmask 458112   ;;  %p2198_p5 = por %p2197_p3, %p2196_p1 }
  0x36   : > { %vm986_vm8 = vcmask 523712   ;;  %vm1784_vm9 = vcmask 523264   ;;  %vm1864_vm10 = vcmask 1043456   ;;  %vm1860_vm11 = vcmask 31744  }
  0x37   : > { %1008 = vmax.xlane.f32.xlu0 %v1007_v12  ;;  %p2199_p6 = pnand %p2198_p5, %p2192_p0 }
  0x38   : > { %1011 = vmax.xlane.f32.xlu1 %v1010_v13 }
  0x3b   : > { %242 = vadd.xlane.f32.xlu0 %v241_v16 }
  0x3c   : > { %1014 = vmax.xlane.f32.xlu1 %v1013_v17 }
  0x3f   : > { %245 = vadd.xlane.f32.xlu0 %v244_v20 }
  0x40   : > { %1017 = vmax.xlane.f32.xlu1 %v1016_v21 }
  0x43   : > { %248 = vadd.xlane.f32.xlu0 %v247_v24 }
  0x44   : > { %1020 = vmax.xlane.f32.xlu1 %v1019_v25 }
  0x47   : > { %251 = vadd.xlane.f32.xlu0 %v250_v29 }
  0x48   : > { %1023 = vmax.xlane.f32.xlu1 %v1022_v30 }
  0x4b   : > { %1026 = vmax.xlane.f32.xlu0 %v1025_v31 }
  0x4c   : > { %1029 = vmax.xlane.f32.xlu1 %v1028_v32 }
  0xb8   : > { %v231_v46 = vpop.xlane.xlu0 %230 }
  0xb9   : > { %v237_v48 = vpop.xlane.xlu1 %236  ;;  %v264_v49 = vrot.slane %v231_v46, %v2414_v38  ;;  %v268_v50 = vrot.slane %v231_v46, %v2417_v39  ;;  %v272_v51 = vrot.slane %v231_v46, %v2420_v40  ;;  %v276_v52 = vrot.slane %v231_v46, %v2423_v41 }
  0xba   : > { %v280_v53 = vrot.slane %v231_v46, %v2426_v42  ;;  %v284_v54 = vrot.slane %v231_v46, %v2429_v43  ;;  %v288_v55 = vrot.slane %v231_v46, %v2432_v44  ;;  %v292_v56 = vrot.slane %v231_v46, %v2435_v45 }
  0xbb   : > { %v517_v57 = vcombine.low %v264_v49, %v268_v50  ;;  %v518_v58 = vcombine.low %v272_v51, %v276_v52  ;;  %v328_v59 = vrot.slane %v237_v48, %v2414_v38  ;;  %v332_v60 = vrot.slane %v237_v48, %v2417_v39 }
  0xbc   : > { %v234_v61 = vpop.xlane.xlu0 %233  ;;  %v519_v62 = vcombine.low %v280_v53, %v284_v54  ;;  %v520_v63 = vcombine.low %v288_v55, %v292_v56  ;;  %v336_v0 = vrot.slane %v237_v48, %v2420_v40  ;;  %v340_v1 = vrot.slane %v237_v48, %v2423_v41 }
  0xbd   : > { %v2452_v2 = vpop.xlane.xlu1 %239  ;;  %v527_v3 = vrot.slane %v517_v57, %v2438_v47  ;;  %v534_v4 = vrot.slane %v518_v58, %v2438_v47  ;;  %v296_v5 = vrot.slane %v234_v61, %v2414_v38  ;;  %v300_v6 = vrot.slane %v234_v61, %v2417_v39 }
  0xbe   : > { %v541_v7 = vrot.slane %v519_v62, %v2438_v47  ;;  %v548_v8 = vrot.slane %v520_v63, %v2438_v47  ;;  %v304_v9 = vrot.slane %v234_v61, %v2420_v40  ;;  %v308_v10 = vrot.slane %v234_v61, %v2423_v41 }
  0xbf   : > { %v549_v11 = vcombine.low %v527_v3, %v534_v4  ;;  %v312_v12 = vrot.slane %v234_v61, %v2426_v42  ;;  %v316_v13 = vrot.slane %v234_v61, %v2429_v43  ;;  %v320_v14 = vrot.slane %v234_v61, %v2432_v44 }
  0xc0   : > { %v550_v15 = vcombine.low %v541_v7, %v548_v8  ;;  %v324_v16 = vrot.slane %v234_v61, %v2435_v45  ;;  %v566_v17 = vcombine.low %v296_v5, %v300_v6  ;;  %v567_v18 = vcombine.low %v304_v9, %v308_v10 }
  0xc1   : > { %v2466_v19 = vpop.xlane.xlu1 %1011  ;;  %v557_v20 = vrot.slane %v549_v11, %v2438_v47  ;;  %v568_v21 = vcombine.low %v312_v12, %v316_v13  ;;  %v344_v22 = vrot.slane %v237_v48, %v2426_v42  ;;  %v348_v23 = vrot.slane %v237_v48, %v2429_v43 }
  0xc2   : > { %v564_v24 = vrot.slane %v550_v15, %v2438_v47  ;;  %v569_v25 = vcombine.low %v320_v14, %v324_v16  ;;  %v576_v26 = vrot.slane %v566_v17, %v2438_v47  ;;  %v583_v27 = vrot.slane %v567_v18, %v2438_v47 }
  0xc3   : > { %v590_v28 = vrot.slane %v568_v21, %v2438_v47  ;;  %v352_v29 = vrot.slane %v237_v48, %v2432_v44  ;;  %v356_v30 = vrot.slane %v237_v48, %v2435_v45  ;;  %v615_v31 = vcombine.low %v328_v59, %v332_v60  ;;  %v1009_v60 = vpop.xlane.xlu0 %1008 }
  0xc4   : > { %v565_v32 = vcombine.low %v557_v20, %v564_v24  ;;  %v597_v34 = vrot.slane %v569_v25, %v2438_v47  ;;  %v598_v35 = vcombine.low %v576_v26, %v583_v27  ;;  %v616_v37 = vcombine.low %v336_v0, %v340_v1 }
  0xc5   : > { %v617_v46 = vcombine.low %v344_v22, %v348_v23  ;;  %v618_v49 = vcombine.low %v352_v29, %v356_v30  ;;  %v625_v50 = vrot.slane %v615_v31, %v2438_v47  ;;  %v360_v51 = vrot.slane %v2452_v2, %v2414_v38  ;;  %v2481_v52 = vpop.xlane.xlu1 %1014 }
  0xc6   : > { %910 = vperm.xlu0 %2157, %v565_v32   ;;  %v599_v53 = vcombine.low %v590_v28, %v597_v34  ;;  %v606_v54 = vrot.slane %v598_v35, %v2438_v47  ;;  %v632_v48 = vrot.slane %v616_v37, %v2438_v47  ;;  %v364_v55 = vrot.slane %v2452_v2, %v2417_v39 }
  0xc7   : > { %v639_v56 = vrot.slane %v617_v46, %v2438_v47  ;;  %v646_v57 = vrot.slane %v618_v49, %v2438_v47  ;;  %v368_v58 = vrot.slane %v2452_v2, %v2420_v40  ;;  %v372_v59 = vrot.slane %v2452_v2, %v2423_v41 }
  0xc8   : > { %v613_v61 = vrot.slane %v599_v53, %v2438_v47  ;;  %v647_v62 = vcombine.low %v625_v50, %v632_v48  ;;  %v376_v63 = vrot.slane %v2452_v2, %v2426_v42  ;;  %v380_v0 = vrot.slane %v2452_v2, %v2429_v43 }
  0xc9   : > { %v648_v1 = vcombine.low %v639_v56, %v646_v57  ;;  %v384_v3 = vrot.slane %v2452_v2, %v2432_v44  ;;  %v388_v4 = vrot.slane %v2452_v2, %v2435_v45  ;;  %v664_v5 = vcombine.low %v360_v51, %v364_v55  ;;  %v1018_v14 = vpop.xlane.xlu1 %1017 }
  0xca   : > { %v614_v6 = vcombine.low %v606_v54, %v613_v61  ;;  %v655_v7 = vrot.slane %v647_v62, %v2438_v47  ;;  %v665_v8 = vcombine.low %v368_v58, %v372_v59  ;;  %v666_v9 = vcombine.low %v376_v63, %v380_v0 }
  0xcb   : > { %v662_v10 = vrot.slane %v648_v1, %v2438_v47  ;;  %v667_v11 = vcombine.low %v384_v3, %v388_v4  ;;  %v674_v12 = vrot.slane %v664_v5, %v2438_v47  ;;  %v1042_v13 = vrot.slane %v1009_v60, %v2414_v38 }
  0xcc   : > { %913 = vperm.xlu1 %2158, %v614_v6   ;;  %v681_v15 = vrot.slane %v665_v8, %v2438_v47  ;;  %v688_v16 = vrot.slane %v666_v9, %v2438_v47  ;;  %v1046_v2 = vrot.slane %v1009_v60, %v2417_v39  ;;  %v1050_v17 = vrot.slane %v1009_v60, %v2420_v40 }
  0xcd   : > { %v663_v18 = vcombine.low %v655_v7, %v662_v10  ;;  %v695_v20 = vrot.slane %v667_v11, %v2438_v47  ;;  %v1054_v21 = vrot.slane %v1009_v60, %v2423_v41  ;;  %v1058_v22 = vrot.slane %v1009_v60, %v2426_v42  ;;  %v1021_v8 = vpop.xlane.xlu1 %1020 }
  0xce   : > { %v696_v23 = vcombine.low %v674_v12, %v681_v15  ;;  %v1062_v24 = vrot.slane %v1009_v60, %v2429_v43  ;;  %v1066_v25 = vrot.slane %v1009_v60, %v2432_v44  ;;  %v1070_v26 = vrot.slane %v1009_v60, %v2435_v45 }
  0xcf   : > { %v697_v27 = vcombine.low %v688_v16, %v695_v20  ;;  %v1295_v28 = vcombine.low %v1042_v13, %v1046_v2  ;;  %v1296_v29 = vcombine.low %v1050_v17, %v1054_v21  ;;  %v1138_v30 = vrot.slane %v1018_v14, %v2414_v38 }
  0xd0   : > { %916 = vperm.xlu1 %2158, %v663_v18   ;;  %v704_v31 = vrot.slane %v696_v23, %v2438_v47  ;;  %v1297_v32 = vcombine.low %v1058_v22, %v1062_v24  ;;  %v1298_v34 = vcombine.low %v1066_v25, %v1070_v26  ;;  %v1142_v35 = vrot.slane %v1018_v14, %v2417_v39 }
  0xd1   : > { %v711_v37 = vrot.slane %v697_v27, %v2438_v47  ;;  %v1305_v46 = vrot.slane %v1295_v28, %v2438_v47  ;;  %v1312_v49 = vrot.slane %v1296_v29, %v2438_v47  ;;  %v1146_v50 = vrot.slane %v1018_v14, %v2420_v40 }
  0xd2   : > { %v1319_v51 = vrot.slane %v1297_v32, %v2438_v47  ;;  %v1326_v53 = vrot.slane %v1298_v34, %v2438_v47  ;;  %v1150_v54 = vrot.slane %v1018_v14, %v2423_v41  ;;  %v1154_v48 = vrot.slane %v1018_v14, %v2426_v42  ;;  %v243_v32 = vpop.xlane.xlu0 %242 }
  0xd3   : > { %v712_v55 = vcombine.low %v704_v31, %v711_v37  ;;  %v1327_v56 = vcombine.low %v1305_v46, %v1312_v49  ;;  %v1158_v57 = vrot.slane %v1018_v14, %v2429_v43  ;;  %v1162_v58 = vrot.slane %v1018_v14, %v2432_v44 }
  0xd4   : > { %v1328_v59 = vcombine.low %v1319_v51, %v1326_v53  ;;  %v1166_v60 = vrot.slane %v1018_v14, %v2435_v45  ;;  %v1442_v61 = vcombine.low %v1138_v30, %v1142_v35  ;;  %v1443_v62 = vcombine.low %v1146_v50, %v1150_v54 }
  0xd5   : > { %919 = vperm.xlu1 %2158, %v712_v55   ;;  %v1335_v63 = vrot.slane %v1327_v56, %v2438_v47  ;;  %v1444_v0 = vcombine.low %v1154_v48, %v1158_v57  ;;  %v1074_v1 = vrot.slane %v2466_v19, %v2414_v38  ;;  %v1078_v3 = vrot.slane %v2466_v19, %v2417_v39 }
  0xd6   : > { %v1342_v4 = vrot.slane %v1328_v59, %v2438_v47  ;;  %v1445_v5 = vcombine.low %v1162_v58, %v1166_v60  ;;  %v1452_v6 = vrot.slane %v1442_v61, %v2438_v47  ;;  %v1459_v7 = vrot.slane %v1443_v62, %v2438_v47 }
  0xd7   : > { %v1466_v9 = vrot.slane %v1444_v0, %v2438_v47  ;;  %v1082_v10 = vrot.slane %v2466_v19, %v2420_v40  ;;  %v1086_v11 = vrot.slane %v2466_v19, %v2423_v41  ;;  %v1090_v12 = vrot.slane %v2466_v19, %v2426_v42 }
  0xd8   : > { %v1343_v13 = vcombine.low %v1335_v63, %v1342_v4  ;;  %v1473_v14 = vrot.slane %v1445_v5, %v2438_v47  ;;  %v1474_v15 = vcombine.low %v1452_v6, %v1459_v7  ;;  %v1094_v16 = vrot.slane %v2466_v19, %v2429_v43 }
  0xd9   : > { %v1098_v2 = vrot.slane %v2466_v19, %v2432_v44  ;;  %v1102_v17 = vrot.slane %v2466_v19, %v2435_v45  ;;  %v1344_v18 = vcombine.low %v1074_v1, %v1078_v3  ;;  %v1345_v20 = vcombine.low %v1082_v10, %v1086_v11  ;;  %v1024_v1 = vpop.xlane.xlu1 %1023 }
  0xda   : > { %1688 = vperm.xlu1 %2158, %v1343_v13   ;;  %v1475_v21 = vcombine.low %v1466_v9, %v1473_v14  ;;  %v1482_v22 = vrot.slane %v1474_v15, %v2438_v47  ;;  %v1346_v23 = vcombine.low %v1090_v12, %v1094_v16  ;;  %v1170_v24 = vrot.slane %v1021_v8, %v2414_v38 }
  0xdb   : > { %v1347_v25 = vcombine.low %v1098_v2, %v1102_v17  ;;  %v1354_v26 = vrot.slane %v1344_v18, %v2438_v47  ;;  %v1361_v27 = vrot.slane %v1345_v20, %v2438_v47  ;;  %v1174_v28 = vrot.slane %v1021_v8, %v2417_v39 }
  0xdc   : > { %v1489_v29 = vrot.slane %v1475_v21, %v2438_v47  ;;  %v1368_v19 = vrot.slane %v1346_v23, %v2438_v47  ;;  %v1178_v30 = vrot.slane %v1021_v8, %v2420_v40  ;;  %v1182_v31 = vrot.slane %v1021_v8, %v2423_v41 }
  0xdd   : > { %v1375_v34 = vrot.slane %v1347_v25, %v2438_v47  ;;  %v1376_v35 = vcombine.low %v1354_v26, %v1361_v27  ;;  %v1186_v37 = vrot.slane %v1021_v8, %v2426_v42  ;;  %v1190_v46 = vrot.slane %v1021_v8, %v2429_v43 }
  0xde   : > { %v1490_v49 = vcombine.low %v1482_v22, %v1489_v29  ;;  %v1194_v50 = vrot.slane %v1021_v8, %v2432_v44  ;;  %v1198_v51 = vrot.slane %v1021_v8, %v2435_v45  ;;  %v1491_v53 = vcombine.low %v1170_v24, %v1174_v28 }
  0xdf   : > { %v1377_v54 = vcombine.low %v1368_v19, %v1375_v34  ;;  %v1384_v48 = vrot.slane %v1376_v35, %v2438_v47  ;;  %v1492_v55 = vcombine.low %v1178_v30, %v1182_v31  ;;  %v1493_v56 = vcombine.low %v1186_v37, %v1190_v46 }
  0xe0   : > { %1697 = vperm.xlu0 %2157, %v1490_v49   ;;  %v1494_v57 = vcombine.low %v1194_v50, %v1198_v51  ;;  %v1501_v58 = vrot.slane %v1491_v53, %v2438_v47  ;;  %v392_v59 = vrot.slane %v243_v32, %v2414_v38  ;;  %v396_v60 = vrot.slane %v243_v32, %v2417_v39 }
  0xe1   : > { %v1391_v61 = vrot.slane %v1377_v54, %v2438_v47  ;;  %v1508_v62 = vrot.slane %v1492_v55, %v2438_v47  ;;  %v1515_v63 = vrot.slane %v1493_v56, %v2438_v47  ;;  %v400_v0 = vrot.slane %v243_v32, %v2420_v40 }
  0xe2   : > { %v1522_v3 = vrot.slane %v1494_v57, %v2438_v47  ;;  %v404_v4 = vrot.slane %v243_v32, %v2423_v41  ;;  %v408_v5 = vrot.slane %v243_v32, %v2426_v42  ;;  %v412_v6 = vrot.slane %v243_v32, %v2429_v43 }
  0xe3   : > { %v1392_v7 = vcombine.low %v1384_v48, %v1391_v61  ;;  %v1523_v8 = vcombine.low %v1501_v58, %v1508_v62  ;;  %v416_v9 = vrot.slane %v243_v32, %v2432_v44  ;;  %v420_v10 = vrot.slane %v243_v32, %v2435_v45  ;;  %v1030_v48 = vpop.xlane.xlu1 %1029 }
  0xe4   : > { %v1524_v11 = vcombine.low %v1515_v63, %v1522_v3  ;;  %v713_v12 = vcombine.low %v392_v59, %v396_v60  ;;  %v714_v13 = vcombine.low %v400_v0, %v404_v4  ;;  %v715_v14 = vcombine.low %v408_v5, %v412_v6  ;;  %v246_v4 = vpop.xlane.xlu0 %245 }
  0xe5   : > { %1691 = vperm.xlu1 %2158, %v1392_v7   ;;  %v1531_v15 = vrot.slane %v1523_v8, %v2438_v47  ;;  %v716_v16 = vcombine.low %v416_v9, %v420_v10  ;;  %v1202_v2 = vrot.slane %v1024_v1, %v2414_v38  ;;  %v1206_v17 = vrot.slane %v1024_v1, %v2417_v39 }
  0xe6   : > { %v1538_v18 = vrot.slane %v1524_v11, %v2438_v47  ;;  %v723_v20 = vrot.slane %v713_v12, %v2438_v47  ;;  %v730_v21 = vrot.slane %v714_v13, %v2438_v47  ;;  %v737_v22 = vrot.slane %v715_v14, %v2438_v47 }
  0xe7   : > { %v744_v23 = vrot.slane %v716_v16, %v2438_v47  ;;  %v1210_v24 = vrot.slane %v1024_v1, %v2420_v40  ;;  %v1214_v25 = vrot.slane %v1024_v1, %v2423_v41  ;;  %v1218_v26 = vrot.slane %v1024_v1, %v2426_v42 }
  0xe8   : > { %v1539_v27 = vcombine.low %v1531_v15, %v1538_v18  ;;  %v745_v28 = vcombine.low %v723_v20, %v730_v21  ;;  %v1222_v29 = vrot.slane %v1024_v1, %v2429_v43  ;;  %v1226_v19 = vrot.slane %v1024_v1, %v2432_v44 }
  0xe9   : > { %v746_v30 = vcombine.low %v737_v22, %v744_v23  ;;  %v1230_v31 = vrot.slane %v1024_v1, %v2435_v45  ;;  %v1540_v32 = vcombine.low %v1202_v2, %v1206_v17  ;;  %v1541_v34 = vcombine.low %v1210_v24, %v1214_v25 }
  0xea   : > { %1700 = vperm.xlu0 %2157, %v1539_v27   ;;  %v753_v35 = vrot.slane %v745_v28, %v2438_v47  ;;  %v1542_v37 = vcombine.low %v1218_v26, %v1222_v29  ;;  %v1106_v46 = vrot.slane %v2481_v52, %v2414_v38  ;;  %v1110_v49 = vrot.slane %v2481_v52, %v2417_v39  ;;  %v249_v28 = vpop.xlane.xlu0 %248 }
  0xeb   : > { %v760_v50 = vrot.slane %v746_v30, %v2438_v47  ;;  %v1543_v51 = vcombine.low %v1226_v19, %v1230_v31  ;;  %v1550_v53 = vrot.slane %v1540_v32, %v2438_v47  ;;  %v1557_v54 = vrot.slane %v1541_v34, %v2438_v47 }
  0xec   : > { %v1564_v55 = vrot.slane %v1542_v37, %v2438_v47  ;;  %v1114_v56 = vrot.slane %v2481_v52, %v2420_v40  ;;  %v1118_v57 = vrot.slane %v2481_v52, %v2423_v41  ;;  %v1122_v58 = vrot.slane %v2481_v52, %v2426_v42 }
  0xed   : > { %v761_v59 = vcombine.low %v753_v35, %v760_v50  ;;  %v1571_v60 = vrot.slane %v1543_v51, %v2438_v47  ;;  %v1572_v61 = vcombine.low %v1550_v53, %v1557_v54  ;;  %v1126_v62 = vrot.slane %v2481_v52, %v2429_v43 }
  0xee   : > { %v1130_v63 = vrot.slane %v2481_v52, %v2432_v44  ;;  %v1134_v0 = vrot.slane %v2481_v52, %v2435_v45  ;;  %v1393_v1 = vcombine.low %v1106_v46, %v1110_v49  ;;  %v1394_v3 = vcombine.low %v1114_v56, %v1118_v57 }
  0xef   : > { %922 = vperm.xlu1 %2158, %v761_v59   ;;  %v1573_v5 = vcombine.low %v1564_v55, %v1571_v60  ;;  %v1580_v6 = vrot.slane %v1572_v61, %v2438_v47  ;;  %v1395_v7 = vcombine.low %v1122_v58, %v1126_v62  ;;  %v1266_v8 = vrot.slane %v1030_v48, %v2414_v38 }
  0xf0   : > { %v1396_v9 = vcombine.low %v1130_v63, %v1134_v0  ;;  %v1403_v10 = vrot.slane %v1393_v1, %v2438_v47  ;;  %v1410_v11 = vrot.slane %v1394_v3, %v2438_v47  ;;  %v1270_v12 = vrot.slane %v1030_v48, %v2417_v39  ;;  %v252_v0 = vpop.xlane.xlu0 %251 }
  0xf1   : > { %v1587_v13 = vrot.slane %v1573_v5, %v2438_v47  ;;  %v1417_v52 = vrot.slane %v1395_v7, %v2438_v47  ;;  %v1274_v14 = vrot.slane %v1030_v48, %v2420_v40  ;;  %v1278_v15 = vrot.slane %v1030_v48, %v2423_v41 }
  0xf2   : > { %v1424_v16 = vrot.slane %v1396_v9, %v2438_v47  ;;  %v1425_v2 = vcombine.low %v1403_v10, %v1410_v11  ;;  %v1282_v17 = vrot.slane %v1030_v48, %v2426_v42  ;;  %v1286_v18 = vrot.slane %v1030_v48, %v2429_v43 }
  0xf3   : > { %v1588_v20 = vcombine.low %v1580_v6, %v1587_v13  ;;  %v1290_v21 = vrot.slane %v1030_v48, %v2432_v44  ;;  %v1294_v22 = vrot.slane %v1030_v48, %v2435_v45  ;;  %v1638_v23 = vcombine.low %v1266_v8, %v1270_v12 }
  0xf4   : > { %v1426_v24 = vcombine.low %v1417_v52, %v1424_v16  ;;  %v1433_v25 = vrot.slane %v1425_v2, %v2438_v47  ;;  %v1639_v26 = vcombine.low %v1274_v14, %v1278_v15  ;;  %v1640_v27 = vcombine.low %v1282_v17, %v1286_v18 }
  0xf5   : > { %1703 = vperm.xlu0 %2157, %v1588_v20   ;;  %v1641_v29 = vcombine.low %v1290_v21, %v1294_v22  ;;  %v1648_v19 = vrot.slane %v1638_v23, %v2438_v47  ;;  %v424_v30 = vrot.slane %v246_v4, %v2414_v38  ;;  %v428_v31 = vrot.slane %v246_v4, %v2417_v39 }
  0xf6   : > { %v1440_v32 = vrot.slane %v1426_v24, %v2438_v47  ;;  %v1655_v34 = vrot.slane %v1639_v26, %v2438_v47  ;;  %v1662_v35 = vrot.slane %v1640_v27, %v2438_v47  ;;  %v432_v37 = vrot.slane %v246_v4, %v2420_v40 }
  0xf7   : > { %v1669_v46 = vrot.slane %v1641_v29, %v2438_v47  ;;  %v436_v49 = vrot.slane %v246_v4, %v2423_v41  ;;  %v440_v50 = vrot.slane %v246_v4, %v2426_v42  ;;  %v444_v51 = vrot.slane %v246_v4, %v2429_v43 }
  0xf8   : > { %v1441_v53 = vcombine.low %v1433_v25, %v1440_v32  ;;  %v1670_v54 = vcombine.low %v1648_v19, %v1655_v34  ;;  %v448_v48 = vrot.slane %v246_v4, %v2432_v44  ;;  %v452_v55 = vrot.slane %v246_v4, %v2435_v45  ;;  %v1027_v25 = vpop.xlane.xlu0 %1026 }
  0xf9   : > { %v1671_v56 = vcombine.low %v1662_v35, %v1669_v46  ;;  %v762_v57 = vcombine.low %v424_v30, %v428_v31  ;;  %v763_v58 = vcombine.low %v432_v37, %v436_v49  ;;  %v764_v59 = vcombine.low %v440_v50, %v444_v51 }
  0xfa   : > { %1694 = vperm.xlu1 %2158, %v1441_v53   ;;  %v1678_v60 = vrot.slane %v1670_v54, %v2438_v47  ;;  %v765_v61 = vcombine.low %v448_v48, %v452_v55  ;;  %v456_v62 = vrot.slane %v249_v28, %v2414_v38  ;;  %v460_v63 = vrot.slane %v249_v28, %v2417_v39 }
  0xfb   : > { %v1685_v1 = vrot.slane %v1671_v56, %v2438_v47  ;;  %v772_v3 = vrot.slane %v762_v57, %v2438_v47  ;;  %v779_v5 = vrot.slane %v763_v58, %v2438_v47  ;;  %v786_v4 = vrot.slane %v764_v59, %v2438_v47 }
  0xfc   : > { %v793_v6 = vrot.slane %v765_v61, %v2438_v47  ;;  %v464_v7 = vrot.slane %v249_v28, %v2420_v40  ;;  %v468_v8 = vrot.slane %v249_v28, %v2423_v41  ;;  %v472_v9 = vrot.slane %v249_v28, %v2426_v42 }
  0xfd   : > { %v1686_v10 = vcombine.low %v1678_v60, %v1685_v1  ;;  %v794_v11 = vcombine.low %v772_v3, %v779_v5  ;;  %v476_v12 = vrot.slane %v249_v28, %v2429_v43  ;;  %v480_v13 = vrot.slane %v249_v28, %v2432_v44 }
  0xfe   : > { %v795_v52 = vcombine.low %v786_v4, %v793_v6  ;;  %v484_v14 = vrot.slane %v249_v28, %v2435_v45  ;;  %v811_v15 = vcombine.low %v456_v62, %v460_v63  ;;  %v812_v16 = vcombine.low %v464_v7, %v468_v8 }
  0xff   : > { %1709 = vperm.xlu0 %2157, %v1686_v10   ;;  %v802_v2 = vrot.slane %v794_v11, %v2438_v47  ;;  %v813_v17 = vcombine.low %v472_v9, %v476_v12  ;;  %v488_v18 = vrot.slane %v252_v0, %v2414_v38  ;;  %v492_v20 = vrot.slane %v252_v0, %v2417_v39 }
 0x100   : > { %v809_v21 = vrot.slane %v795_v52, %v2438_v47  ;;  %v814_v22 = vcombine.low %v480_v13, %v484_v14  ;;  %v821_v23 = vrot.slane %v811_v15, %v2438_v47  ;;  %v828_v24 = vrot.slane %v812_v16, %v2438_v47  ;;  %v1783_v15 = vld [vmem:[%s2797_s1 + $0x38] sm:$0xff]  ;;  %v1782_v16 = vld [vmem:[%s2797_s1 + $0x30] sm:$0xff] }
 0x101   : > { %v835_v26 = vrot.slane %v813_v17, %v2438_v47  ;;  %v496_v27 = vrot.slane %v252_v0, %v2420_v40  ;;  %v500_v28 = vrot.slane %v252_v0, %v2423_v41  ;;  %v504_v29 = vrot.slane %v252_v0, %v2426_v42  ;;  %v1780_v17 = vld [vmem:[%s2797_s1 + $0x20] sm:$0xff] }
 0x102   : > { %v810_v19 = vcombine.low %v802_v2, %v809_v21  ;;  %v842_v30 = vrot.slane %v814_v22, %v2438_v47  ;;  %v843_v31 = vcombine.low %v821_v23, %v828_v24  ;;  %v508_v32 = vrot.slane %v252_v0, %v2429_v43  ;;  %v1781_v2 = vld [vmem:[%s2797_s1 + $0x28] sm:$0xff]  ;;  %v1776_v22 = vld [vmem:[%s2797_s1] sm:$0xff] }
 0x103   : > { %v512_v34 = vrot.slane %v252_v0, %v2432_v44  ;;  %v516_v35 = vrot.slane %v252_v0, %v2435_v45  ;;  %v860_v37 = vcombine.low %v488_v18, %v492_v20  ;;  %v861_v46 = vcombine.low %v496_v27, %v500_v28  ;;  %v1779_v18 = vld [vmem:[%s2797_s1 + $0x18] sm:$0xff]  ;;  %v1778_v20 = vld [vmem:[%s2797_s1 + $0x10] sm:$0xff]  ;;  %v1777_v21 = vld [vmem:[%s2797_s1 + $0x8] sm:$0xff] }
 0x104   : > { %925 = vperm.xlu1 %2158, %v810_v19   ;;  %v844_v49 = vcombine.low %v835_v26, %v842_v30  ;;  %v851_v50 = vrot.slane %v843_v31, %v2438_v47  ;;  %v862_v51 = vcombine.low %v504_v29, %v508_v32  ;;  %v1234_v53 = vrot.slane %v1027_v25, %v2414_v38 }
 0x105   : > { %v863_v54 = vcombine.low %v512_v34, %v516_v35  ;;  %v870_v48 = vrot.slane %v860_v37, %v2438_v47  ;;  %v877_v55 = vrot.slane %v861_v46, %v2438_v47  ;;  %v1238_v56 = vrot.slane %v1027_v25, %v2417_v39 }
 0x106   : > { %v858_v57 = vrot.slane %v844_v49, %v2438_v47  ;;  %v884_v58 = vrot.slane %v862_v51, %v2438_v47  ;;  %v1242_v59 = vrot.slane %v1027_v25, %v2420_v40  ;;  %v1246_v60 = vrot.slane %v1027_v25, %v2423_v41 }
 0x107   : > { %v891_v61 = vrot.slane %v863_v54, %v2438_v47  ;;  %v892_v62 = vcombine.low %v870_v48, %v877_v55  ;;  %v1250_v38 = vrot.slane %v1027_v25, %v2426_v42  ;;  %v1254_v63 = vrot.slane %v1027_v25, %v2429_v43 }
 0x108   : > { %v859_v0 = vcombine.low %v851_v50, %v858_v57  ;;  %v1258_v1 = vrot.slane %v1027_v25, %v2432_v44  ;;  %v1262_v39 = vrot.slane %v1027_v25, %v2435_v45  ;;  %v1589_v3 = vcombine.low %v1234_v53, %v1238_v56 }
 0x109   : > { %v893_v5 = vcombine.low %v884_v58, %v891_v61  ;;  %v900_v4 = vrot.slane %v892_v62, %v2438_v47  ;;  %v1590_v6 = vcombine.low %v1242_v59, %v1246_v60  ;;  %v1591_v40 = vcombine.low %v1250_v38, %v1254_v63 }
 0x10a   : > { %928 = vperm.xlu1 %2158, %v859_v0   ;;  %v1592_v41 = vcombine.low %v1258_v1, %v1262_v39  ;;  %v1599_v7 = vrot.slane %v1589_v3, %v2438_v47  ;;  %v2276_v52 = vmov 0.0   ;;  %v2277_v14 = vmov -inf  }
 0x10b   : > { %v907_v8 = vrot.slane %v893_v5, %v2438_v47  ;;  %v1606_v42 = vrot.slane %v1590_v6, %v2438_v47  ;;  %v1613_v43 = vrot.slane %v1591_v40, %v2438_v47  ;;  %210 = vst.msk [vmem:[#allocation2] sm:$0x1] %vm209_vm0, %v2276_v52  ;;  %2064 = vmatprep.subr.mxu0 %v2276_v52  ;;  %211 = vst.msk [vmem:[#allocation3] sm:$0x1] %vm209_vm0, %v2277_v14 }
 0x10c   : > { %v1620_v44 = vrot.slane %v1592_v41, %v2438_v47  ;;  %2083 = vmatprep.subr.mxu1 %v2276_v52  ;;  %2065 = vmatpush3.msra.mxu0 %v1783_v15  ;;  %v934_v19 = vand.u32 127, %v261_v33 }
 0x10d   : > { %v908_v9 = vcombine.low %v900_v4, %v907_v8  ;;  %v1621_v45 = vcombine.low %v1599_v7, %v1606_v42  ;;  %2080 = vmatprep.mubr.msk.f32.mxu0 %vm2278_vm1, %v2276_v52  ;;  %2066 = vmatprep.subr.mxu0 %v2276_v52 }
 0x10e   : > { %v1622_v10 = vcombine.low %v1613_v43, %v1620_v44  ;;  %2085 = vmatprep.mubr.msk.f32.mxu1 %vm2278_vm1, %v2276_v52  ;;  %2067 = vmatpush3.msra.mxu0 %v1782_v16  ;;  %v939_v31 = vadd.s32 4294967288, %v934_v19  ;;  %v946_v32 = vadd.s32 4294967280, %v934_v19  ;;  %v953_v35 = vadd.s32 4294967272, %v934_v19 }
 0x10f   : > { %931 = vperm.xlu1 %2158, %v908_v9   ;;  %v1629_v11 = vrot.slane %v1621_v45, %v2438_v47  ;;  %2068 = vmatprep.subr.mxu0 %v2276_v52  ;;  %v960_v37 = vadd.s32 4294967264, %v934_v19  ;;  %v974_v51 = vadd.s32 4294967248, %v934_v19  ;;  %v937_v53 = vsub.s32 %v934_v19, %v2411_v36 }
 0x110   : > { %v1636_v12 = vrot.slane %v1622_v10, %v2438_v47  ;;  %2069 = vmatpush3.msra.mxu0 %v1781_v2  ;;  %v942_v46 = vsub.s32 %v939_v31, %v2411_v36  ;;  %v949_v50 = vsub.s32 %v946_v32, %v2411_v36  ;;  %v956_v54 = vsub.s32 %v953_v35, %v2411_v36 }
 0x111   : > { %2070 = vmatprep.subr.mxu0 %v2276_v52  ;;  %v967_v48 = vadd.s32 4294967256, %v934_v19  ;;  %v963_v55 = vsub.s32 %v960_v37, %v2411_v36  ;;  %v981_v60 = vadd.s32 4294967240, %v934_v19  ;;  %v977_v61 = vsub.s32 %v974_v51, %v2411_v36 }
 0x112   : > { %v1637_v13 = vcombine.low %v1629_v11, %v1636_v12  ;;  %2071 = vmatpush3.msra.mxu0 %v1780_v17  ;;  %v228_v2 = vld [vmem:[#allocation2] sm:$0x1] }
 0x113   : > { %2072 = vmatprep.subr.mxu0 %v2276_v52  ;;  %v970_v0 = vsub.s32 %v967_v48, %v2411_v36  ;;  %v984_v43 = vsub.s32 %v981_v60, %v2411_v36 }
 0x114   : > { %1706 = vperm.xlu1 %2158, %v1637_v13   ;;  %2073 = vmatpush3.msra.mxu0 %v1779_v18 }
 0x115   : > { %2074 = vmatprep.subr.mxu0 %v2276_v52 }
 0x116   : > { %2075 = vmatpush3.msra.mxu0 %v1778_v20 }
 0x117   : > { %2076 = vmatprep.subr.mxu0 %v2276_v52 }
 0x118   : > { %2077 = vmatpush3.msra.mxu0 %v1777_v21 }
 0x119   : > { %2078 = vmatprep.subr.mxu0 %v2276_v52 }
 0x11a   : > { %2079 = vmatpush3.msra.mxu0 %v1776_v22 }
 0x141   : > { %v911_v29 = vpop.permute.xlu0 %910 }
 0x142   : > { %v938_v62 = vrot.slane %v911_v29, %v937_v53 }
 0x147   : > { %v914_v23 = vpop.permute.xlu1 %913 }
 0x148   : > { %v943_v56 = vrot.slane %v914_v23, %v942_v46 }
 0x14a   : > { %v945_v3 = vsel %vm944_vm2, %v943_v56, %v938_v62 }
 0x14b   : > { %v917_v24 = vpop.permute.xlu1 %916 }
 0x14c   : > { %v950_v58 = vrot.slane %v917_v24, %v949_v50 }
 0x14e   : > { %v952_v40 = vsel %vm951_vm3, %v950_v58, %v945_v3 }
 0x150   : > { %v920_v25 = vpop.permute.xlu1 %919 }
 0x151   : > { %v957_v38 = vrot.slane %v920_v25, %v956_v54 }
 0x153   : > { %v959_v42 = vsel %vm958_vm4, %v957_v38, %v952_v40 }
 0x155   : > { %v1689_v26 = vpop.permute.xlu1 %1688 }
 0x156   : > { %v1714_v63 = vrot.slane %v1689_v26, %v937_v53 }
 0x15b   : > { %v1698_v34 = vpop.permute.xlu0 %1697 }
 0x15c   : > { %v1728_v5 = vrot.slane %v1698_v34, %v956_v54  ;;  %v1859_v34 = vld [vmem:[%s2798_s2] sm:$0xf] }
 0x15d   : > { %2084 = vmatpush3.msk.msra.mxu1 %vm1864_vm10, %v1859_v34 }
 0x160   : > { %v1692_v27 = vpop.permute.xlu1 %1691 }
 0x161   : > { %v1718_v57 = vrot.slane %v1692_v27, %v942_v46  ;;  %v1006_v27 = vld [vmem:[#allocation3] sm:$0x1] }
 0x163   : > { %v1719_v4 = vsel %vm944_vm2, %v1718_v57, %v1714_v63 }
 0x165   : > { %v1701_v33 = vpop.permute.xlu0 %1700 }
 0x166   : > { %v1733_v44 = vrot.slane %v1701_v33, %v963_v55 }
 0x16a   : > { %v923_v28 = vpop.permute.xlu1 %922 }
 0x16b   : > { %v964_v39 = vrot.slane %v923_v28, %v963_v55 }
 0x16d   : > { %v966_v9 = vsel %vm965_vm5, %v964_v39, %v959_v42 }
 0x170   : > { %v1704_v41 = vpop.permute.xlu0 %1703 }
 0x171   : > { %v1738_v16 = vrot.slane %v1704_v41, %v970_v0 }
 0x175   : > { %v1695_v30 = vpop.permute.xlu1 %1694 }
 0x176   : > { %v1723_v59 = vrot.slane %v1695_v30, %v949_v50 }
 0x178   : > { %v1724_v7 = vsel %vm951_vm3, %v1723_v59, %v1719_v4 }
 0x179   : > { %v1729_v10 = vsel %vm958_vm4, %v1728_v5, %v1724_v7 }
 0x17a   : > { %v1710_v14 = vpop.permute.xlu0 %1709  ;;  %v1734_v36 = vsel %vm965_vm5, %v1733_v44, %v1729_v10 }
 0x17b   : > { %v1748_v21 = vrot.slane %v1710_v14, %v984_v43  ;;  %v1739_v22 = vsel %vm972_vm6, %v1738_v16, %v1734_v36 }
 0x17f   : > { %v926_v49 = vpop.permute.xlu1 %925 }
 0x180   : > { %v971_v6 = vrot.slane %v926_v49, %v970_v0 }
 0x182   : > { %v973_v11 = vsel %vm972_vm6, %v971_v6, %v966_v9 }
 0x185   : > { %v929_v1 = vpop.permute.xlu1 %928 }
 0x186   : > { %v978_v8 = vrot.slane %v929_v1, %v977_v61 }
 0x188   : > { %v980_v13 = vsel %vm979_vm7, %v978_v8, %v973_v11 }
 0x18a   : > { %v932_v45 = vpop.permute.xlu1 %931 }
 0x18b   : > { %v985_v12 = vrot.slane %v932_v45, %v984_v43 }
 0x18d   : > { %v987_v52 = vsel %vm986_vm8, %v985_v12, %v980_v13 }
 0x18e   : > { %v994_v15 = vrot.slane %v987_v52, %v2438_v47 }
 0x18f   : > { %v1707_v17 = vpop.permute.xlu1 %1706 }
 0x190   : > { %v1001_v18 = vrot.slane %v994_v15, %v2438_v47  ;;  %v1743_v20 = vrot.slane %v1707_v17, %v977_v61 }
 0x192   : > { %v1003_v23 = vadd.f32 %v1001_v18, %v228_v2  ;;  %v1744_v24 = vsel %vm979_vm7, %v1743_v20, %v1739_v22 }
 0x193   : > { %v1749_v25 = vsel %vm986_vm8, %v1748_v21, %v1744_v24 }
 0x194   : > { %1005 = vst.msk [vmem:[#allocation2] sm:$0x1] %vm209_vm0, %v1003_v23  ;;  %v1756_v26 = vrot.slane %v1749_v25, %v2438_v47 }
 0x196   : > { %v1763_v28 = vrot.slane %v1756_v26, %v2438_v47 }
 0x198   : > { %v1765_v29 = vmax.f32 %v1006_v27, %v1763_v28 }
 0x19a   : > { %1766 = vst.msk [vmem:[#allocation3] sm:$0x1] %vm209_vm0, %v1765_v29 }
 0x19b   : > { %v1770_v19 = vld [vmem:[#allocation2] sm:$0x1] }
 0x19c   : > { %v1771_v30 = vmul.f32 0.00390625, %v1770_v19 }
 0x19e   : > { %1773 = vst.msk [vmem:[#allocation4] sm:$0x1] %vm209_vm0, %v1771_v30 }
 0x1a1   : > { %v1772_v31 = vld [vmem:[#allocation3] sm:$0x1] }
 0x1a2   : > { %1774 = vst.msk [vmem:[#allocation4 + $0x1] sm:$0x1] %vm209_vm0, %v1772_v31 }
 0x1a9   : > { %v1775_v32 = vld [vmem:[#allocation4] sm:$0x3] }
 0x1aa   : > { %2081 = vmatmul.mubr.msk.f32.vlgmr.msra.gmra.mxu0 %vm1784_vm9, %v1775_v32 }
 0x26a   : > { %v1854_v47 = vpop.f32.mrf.mxu0 }
 0x26b   : > { %v1858_v35 = vmax.f32 %v1854_v47, 0.0 }
 0x26c   : > { %v2082_v37 = vpop.f32.mrf.mxu0 }
 0x26d   : > { %2086 = vmatmul.mubr.msk.f32.vlgmr.msra.gmra.mxu1 %vm1860_vm11, %v1858_v35 }
 0x32d   : > { %v1934_v46 = vpop.f32.mrf.mxu1 }
 0x32e   : > { %v1939_v49 = vrot.slane %v1934_v46, 1 }
 0x32f   : > { %v2087_v50 = vpop.f32.mrf.mxu1 }
 0x330   : > { %v1941_v51 = vadd.f32 %v1939_v49, %v1934_v46 }
 0x332   : > { %v1942_v53 = vmul.f32 0.5, %v1941_v51 }
 0x334   : > { %2159 = vtanh.f32 %v1942_v53 }
 0x341   : > { %v2160_v54 = vpop.eup %2159 }
 0x342   : > { %v1944_v48 = vadd.f32 1.0, %v2160_v54 }
 0x344   : > { %v1945_v55 = vmul.f32 0.5, %v1944_v48 }
 0x346   : > { %1946 = vst.msk [vmem:[%s203_s7] sm:$0x1] %vm209_vm0, %v1945_v55 }
 0x347   : > { %2202 = shalt.err (!%p2199_p6)
}
 0x348   : > { %s2203_s23 = scalar_lea.hbm %s1958_s11, 16  ;;  %s2207_s30 = scalar_lea.hbm %s2799_s3, 32 }
 0x349   : > { %p2204_p7 = scmp.ne.s32.totalorder %s1958_s11, %s2203_s23  ;;  %p2208_p13 = scmp.lt.s32.totalorder %s1958_s11, %s2799_s3 }
 0x34a   : > { %p2209_p2 = scmp.lt.s32.totalorder %s2207_s30, %s2203_s23 }
 0x34b   : > { %p2205_p10 = pnand %p2204_p7, %p2351_p9 }
 0x34c   : > { %p2210_p8 = por %p2209_p2, %p2208_p13 }
 0x34d   : > { %p2206_p4 = pneg %p2205_p10 }
 0x34f   : > { %p2211_p12 = pnand %p2210_p8, %p2206_p4 }
 0x351   : > { %2214 = shalt.err (!%p2211_p12)
}
 0x352   : > { %2090 = dma.vmem_to_hbm [thread:$0]  (%p2351_p9), %s1961_s8, 16, %s1958_s11, %s1948_s18  }
 0x353 PF: > { %s1972_s5 = sand.u32 1, %s2249_s12   ;;  %p2805_p0 = scmp.ge.s32.totalorder %s2269_s17, 2 }
 0x354   : > { %s1973_s6 = scalar_lea.sflag [#allocation7], %s1972_s5 }
 0x355   : > { %p2097_p1 = pnand %p2805_p0, %p2358_p11 }
 0x357   : > { %p2098_p3 = pneg %p2097_p1 }
 0x359   : > { %2244 = dma.done.wait (%p2098_p3), %s1973_s6, 16  }
 0x35a   : > { %2246 = vsyncadd (%p2098_p3), %s1973_s6, 4294967280  ;;  %s19_s17 = sadd.s32 1, %s2269_s17   ;;  %s2806_s12 = smov %s2253_s13 }
 0x35b   : > { %p16_p5 = scmp.ge.s32.totalorder %s19_s17, 4   ;;  %s2807_s13 = smov %s2257_s14 }
 0x35c   : > { %s2808_s14 = smov %s2356_s26  ;;  %s2809_s15 = smov %s2265_s16 }
 0x35d   : > { %s2810_s16 = smov %s2812_s20  ;;  %18 = sbr.rel (!%p16_p5) target bundleno = 6 (0x6), region = 85 }
 0x362   :  { %1977 = vsyncpa [#allocation6], 1 }
 0x363   :  { %1979 = vsyncpa [#allocation6 + $0x1], 1 }
 0x364   :  { %1980 = vsyncpa [#allocation7], 1 }
 0x365   :  { %1982 = vsyncpa [#allocation7 + $0x1], 1 }

</bundles_post_ra>
